<compile_context>
chip_gen: v5e
topology: v5e:2x2
jax: 0.10.0
libtpu: 0.0.40
codegen_flags: <defaults>
</compile_context>

<pallas_src>
import functools
import math

import jax
import jax.numpy as jnp
from jax import lax
from jax.experimental import pallas as pl
from jax.experimental.pallas import tpu as pltpu

NUM_HEADS = 4
NEG_SLOPE = 0.01      # torch.nn.LeakyReLU default
NEG_FILL = -1e30


# ----------------------------- in-kernel helpers -----------------------------
def _leaky(x):
    return jnp.where(x >= 0, x, NEG_SLOPE * x)


def _lin(x, w_ref, b_ref):
    w = w_ref[...]
    y = jnp.dot(x.astype(w.dtype), w, preferred_element_type=jnp.float32)
    return y + b_ref[...]


def _mlp(x, w1, b1, w2, b2, w3, b3):
    h = _leaky(_lin(x, w1, b1))
    h = _leaky(_lin(h, w2, b2))
    return _lin(h, w3, b3)


# ------------------------- stage 1: prepass kernel ---------------------------
def prepass_kernel(x_ref, wp1, bp1, wp2, bp2, wp3, bp3, w_qkvs, b_qkvs,
                   qkvs_ref):
    # mlp_prep followed by the fused (q*scale | k | v | skip) projection.
    h_init = _mlp(x_ref[...], wp1, bp1, wp2, bp2, wp3, bp3)      # [TN, D]
    qkvs_ref[...] = _lin(h_init, w_qkvs, b_qkvs)                 # [TN, 4D]


# --------------------- stage 2: node/dag per-tile kernel ----------------------
def node_dag_kernel(
    # streamed per destination-node tile
    q_ref, skip_ref, x_ref, adj_ref, seg_nd_ref,
    # resident attention operands (block-diagonal head packing)
    k_hat_ref, v_hat_ref, dmap_ref,
    # NodeEncoder.mlp_update
    wu1, bu1, wu2, bu2, wu3, bu3,
    # DagEncoder.mlp (first layer split into x / h_node parts)
    wd1x, wd1h, bd1, wd2, bd2, wd3, bd3,
    # outputs
    h_node_ref, dag_part_ref,
    *, n_heads,
):
    # ---- multi-head masked softmax attention (TransformerConv), fused -------
    # scores[:, h*N:(h+1)*N] == (q_h @ k_h.T) / sqrt(c)   (scale pre-folded)
    scores = jnp.dot(q_ref[...], k_hat_ref[...],
                     preferred_element_type=jnp.float32)          # [TN, H*N]

    adjf = adj_ref[...].astype(jnp.float32)                       # int8 -> f32
    adj4 = jnp.concatenate([adjf] * n_heads, axis=1)              # [TN, H*N]
    edge4 = adj4 > 0.0

    masked = jnp.where(edge4, scores, NEG_FILL)
    # Single global row max: a valid stabilizer for every head (it cancels in
    # the per-head normalization below).
    m = jnp.max(masked, axis=-1, keepdims=True)                   # [TN, 1]
    # Explicit adj==0 zeroing (also zeroes in-degree-0 rows).
    p = jnp.where(edge4, jnp.exp(masked - m), 0.0)                # [TN, H*N]

    p_c = p.astype(v_hat_ref.dtype)
    pv = jnp.dot(p_c, v_hat_ref[...],
                 preferred_element_type=jnp.float32)              # [TN, D]
    # Per-head softmax denominators, already broadcast over each head's
    # c output columns (dmap is the 0/1 block-diagonal ones map).
    dsum = jnp.dot(p_c, dmap_ref[...],
                   preferred_element_type=jnp.float32)            # [TN, D]
    inv = jnp.where(dsum > 0.0, 1.0 / dsum, 0.0)                  # deg-0 -> 0
    h_tc = pv * inv + skip_ref[...].astype(jnp.float32)           # [TN, D]

    # ---- NodeEncoder residual update ----------------------------------------
    h_node = h_tc + _mlp(h_tc, wu1, bu1, wu2, bu2, wu3, bu3)
    h_node_ref[...] = h_node

    # ---- DagEncoder: mlp(cat([x, h_node], 1)) via split first layer ---------
    x_t = x_ref[...]
    w1x = wd1x[...]
    w1h = wd1h[...]
    d1 = _leaky(
        jnp.dot(x_t.astype(w1x.dtype), w1x, preferred_element_type=jnp.float32)
        + jnp.dot(h_node.astype(w1h.dtype), w1h,
                  preferred_element_type=jnp.float32)
        + bd1[...])
    d2 = _leaky(_lin(d1, wd2, bd2))
    h_per_node = _lin(d2, wd3, bd3)                               # [TN, D]

    # segment_csr partial: this tile's node->dag contribution (f32).
    dag_part_ref[...] = lax.dot_general(
        seg_nd_ref[...], h_per_node, (((0,), (0,)), ((), ())),
        preferred_element_type=jnp.float32)                       # [G, D]


# ------------------------- stage 3: finalize kernel ---------------------------
def finalize_kernel(parts_ref, seg_do_ref, wg1, bg1, wg2, bg2, wg3, bg3,
                    h_dag_ref, h_glob_ref, *, num_tiles):
    acc = parts_ref[0]
    for t in range(1, num_tiles):
        acc = acc + parts_ref[t]
    h_dag_ref[...] = acc                                          # [G, D]
    h_mlp = _mlp(acc, wg1, bg1, wg2, bg2, wg3, bg3)
    h_glob_ref[...] = jnp.dot(seg_do_ref[...], h_mlp,
                              preferred_element_type=jnp.float32)  # [O, D]


# ------------------------------- host helpers ---------------------------------
def _full_spec(arr):
    return pl.BlockSpec(arr.shape, lambda i: (0,) * arr.ndim)


def _block_diag(blocks):
    h = len(blocks)
    r, c = blocks[0].shape
    out = jnp.zeros((h * r, h * c), blocks[0].dtype)
    for i, b in enumerate(blocks):
        out = out.at[i * r:(i + 1) * r, i * c:(i + 1) * c].set(b)
    return out


def _vmem_capacity_bytes(default=128 * 1024 * 1024):
    try:
        return int(getattr(pltpu.get_tpu_info(), "vmem_capacity_bytes", default))
    except Exception:
        return default


def _nbytes(a):
    return int(a.size * jnp.dtype(a.dtype).itemsize)


# ------------------------------- host wrapper ---------------------------------
def encoder_forward(x, adj, seg_nd_t, seg_do, params, *, tile_n=None,
                    use_bf16=False):
    n, f = x.shape
    (wp1, bp1, wp2, bp2, wp3, bp3,
     wq, bq, wk, bk, wv, bv, ws, bs,
     wu1, bu1, wu2, bu2, wu3, bu3,
     wd1, bd1, wd2, bd2, wd3, bd3,
     wg1, bg1, wg2, bg2, wg3, bg3) = params

    d = wp3.shape[1]
    h1 = wp1.shape[1]
    h2 = wp2.shape[1]
    g = seg_nd_t.shape[1]
    o = seg_do.shape[0]
    c = d // NUM_HEADS
    hn = NUM_HEADS * n
    scale = 1.0 / math.sqrt(c)

    # Tiny graphs: one tile.  Large graphs: big tiles (>=256 rows) to fill the
    # MXU pass height and amortize the per-grid-step pipeline overhead.
    if tile_n is None:
        tile_n = n if n <= 512 else 256
    assert n % tile_n == 0, "node count must be a multiple of tile_n"
    assert tile_n % 32 == 0 or tile_n == n, \
        "tile_n should be a multiple of 32 (int8 adjacency sublane tiling)"
    num_tiles = n // tile_n

    # ---------------- stage 1: node-prep MLP + fused q|k|v|skip --------------
    w_qkvs = jnp.concatenate([wq * scale, wk, wv, ws], axis=1)    # [D, 4D]
    b_qkvs = jnp.concatenate([bq * scale, bk, bv, bs], axis=1)    # [1, 4D]
    prep_w = [wp1, bp1, wp2, bp2, wp3, bp3, w_qkvs, b_qkvs]

    qkvs = pl.pallas_call(
        prepass_kernel,
        out_shape=jax.ShapeDtypeStruct((n, 4 * d), jnp.float32),
        grid_spec=pltpu.PrefetchScalarGridSpec(
            num_scalar_prefetch=0,
            grid=(num_tiles,),
            in_specs=[pl.BlockSpec((tile_n, f), lambda i: (i, 0))]
                     + [_full_spec(p) for p in prep_w],
            out_specs=pl.BlockSpec((tile_n, 4 * d), lambda i: (i, 0))),
        compiler_params=pltpu.CompilerParams(
            dimension_semantics=("parallel",)),
    )(x, *prep_w)

    # ---------------- stage 2 host prep: block-diagonal head packing ---------
    q, k, v, skip = (qkvs[:, j * d:(j + 1) * d] for j in range(4))
    k_hat = _block_diag([k[:, h * c:(h + 1) * c].T
                         for h in range(NUM_HEADS)])              # [D, H*N]
    v_hat = _block_diag([v[:, h * c:(h + 1) * c]
                         for h in range(NUM_HEADS)])              # [H*N, D]
    dmap = _block_diag([jnp.ones((n, c), jnp.float32)] * NUM_HEADS)  # [H*N, D]

    wd1x, wd1h = wd1[:f, :], wd1[f:, :]
    main_w = [wu1, bu1, wu2, bu2, wu3, bu3,
              wd1x, wd1h, bd1, wd2, bd2, wd3, bd3]
    if use_bf16:
        # Weights / attention operands in bf16 (halves their VMEM + DMA);
        # biases, softmax, reductions and accumulation stay f32.
        main_w = [p.astype(jnp.bfloat16) if p.shape[0] > 1 else p
                  for p in main_w]
        q, skip = q.astype(jnp.bfloat16), skip.astype(jnp.bfloat16)
        k_hat, v_hat, dmap = (a.astype(jnp.bfloat16)
                              for a in (k_hat, v_hat, dmap))

    adj_i8 = adj.astype(jnp.int8)
    main_inputs = [q, skip, x, adj_i8, seg_nd_t, k_hat, v_hat, dmap] + main_w

    main_in_specs = [
        pl.BlockSpec((tile_n, d), lambda i: (i, 0)),   # q (pre-scaled)
        pl.BlockSpec((tile_n, d), lambda i: (i, 0)),   # skip
        pl.BlockSpec((tile_n, f), lambda i: (i, 0)),   # x tile
        pl.BlockSpec((tile_n, n), lambda i: (i, 0)),   # int8 adjacency stripe
        pl.BlockSpec((tile_n, g), lambda i: (i, 0)),   # node->dag one-hot rows
        _full_spec(k_hat), _full_spec(v_hat), _full_spec(dmap),
    ] + [_full_spec(p) for p in main_w]

    main_out_specs = (
        pl.BlockSpec((tile_n, d), lambda i: (i, 0)),        # h_node tile
        pl.BlockSpec((None, g, d), lambda i: (i, 0, 0)),    # per-tile dag partial
    )

    # ---- VMEM budget derived from actual buffer sizes, capped by capacity ---
    resident_b = sum(_nbytes(a) for a in [k_hat, v_hat, dmap] + main_w)
    stream_b = sum(_nbytes(a) // num_tiles
                   for a in (q, skip, x, adj_i8, seg_nd_t))
    stream_b += tile_n * d * 4 + g * d * 4                 # output blocks
    interm_b = 6 * tile_n * hn * 4                         # scores/mask/p temps
    needed = 2 * (resident_b + stream_b) + interm_b        # 2x: double buffering
    cap = _vmem_capacity_bytes()
    vmem_limit = int(min(max(needed + (8 << 20), 16 << 20), int(0.7 * cap)))
    vmem_limit = max(vmem_limit, needed + (2 << 20))

    # ---- advisory cost estimate ----------------------------------------------
    def mlp_flops(rows, dims):
        return 2 * rows * sum(a * b for a, b in zip(dims[:-1], dims[1:]))
    flops = (2 * n * d * hn                       # scores
             + 2 * 2 * n * hn * d                 # pv + denominators
             + mlp_flops(n, (d, h1, h2, d))       # mlp_update
             + mlp_flops(n, (f + d, h1, h2, d))   # dag mlp
             + 2 * n * g * d)                     # segment matmul
    bytes_accessed = (sum(_nbytes(a) for a in main_inputs)
                      + 4 * (n * d + num_tiles * g * d))
    cost = pl.CostEstimate(flops=int(flops), transcendentals=int(n * hn),
                           bytes_accessed=int(bytes_accessed))

    main_kernel = functools.partial(node_dag_kernel, n_heads=NUM_HEADS)
    h_node, dag_parts = pl.pallas_call(
        main_kernel,
        out_shape=(jax.ShapeDtypeStruct((n, d), jnp.float32),
                   jax.ShapeDtypeStruct((num_tiles, g, d), jnp.float32)),
        grid_spec=pltpu.PrefetchScalarGridSpec(
            num_scalar_prefetch=0,
            grid=(num_tiles,),
            in_specs=main_in_specs,
            out_specs=main_out_specs),
        compiler_params=pltpu.CompilerParams(
            dimension_semantics=("parallel",),   # no cross-tile state any more
            vmem_limit_bytes=vmem_limit),
        cost_estimate=cost,
    )(*main_inputs)

    # ---------------- stage 3: dag reduction + GlobalEncoder -----------------
    glob_w = [wg1, bg1, wg2, bg2, wg3, bg3]
    fin_inputs = [dag_parts, seg_do] + glob_w
    fin_kernel = functools.partial(finalize_kernel, num_tiles=num_tiles)
    h_dag, h_glob = pl.pallas_call(
        fin_kernel,
        out_shape=(jax.ShapeDtypeStruct((g, d), jnp.float32),
                   jax.ShapeDtypeStruct((o, d), jnp.float32)),
        grid_spec=pltpu.PrefetchScalarGridSpec(
            num_scalar_prefetch=0,
            grid=(1,),
            in_specs=[_full_spec(a) for a in fin_inputs],
            out_specs=(pl.BlockSpec((g, d), lambda i: (0, 0)),
                       pl.BlockSpec((o, d), lambda i: (0, 0)))),
    )(*fin_inputs)

    return {"node": h_node, "dag": h_dag, "glob": h_glob}


# --------------------------- plain-JAX reference ------------------------------
def reference_forward(x, adj, seg_nd, seg_do, params):
    (wp1, bp1, wp2, bp2, wp3, bp3,
     wq, bq, wk, bk, wv, bv, ws, bs,
     wu1, bu1, wu2, bu2, wu3, bu3,
     wd1, bd1, wd2, bd2, wd3, bd3,
     wg1, bg1, wg2, bg2, wg3, bg3) = params

    def lin(x_, w, b):
        return x_ @ w + b

    def leaky(x_):
        return jnp.where(x_ >= 0, x_, NEG_SLOPE * x_)

    def mlp(x_, w1, b1, w2, b2, w3, b3):
        return lin(leaky(lin(leaky(lin(x_, w1, b1)), w2, b2)), w3, b3)

    h_init = mlp(x, wp1, bp1, wp2, bp2, wp3, bp3)
    q, k, v = lin(h_init, wq, bq), lin(h_init, wk, bk), lin(h_init, wv, bv)
    skip = lin(h_init, ws, bs)
    d = q.shape[-1]
    c = d // NUM_HEADS
    outs = []
    for h in range(NUM_HEADS):
        qh, kh, vh = (a[:, h * c:(h + 1) * c] for a in (q, k, v))
        scores = (qh @ kh.T) / float(c) ** 0.5
        masked = jnp.where(adj > 0, scores, -1e30)
        m = jnp.max(masked, axis=-1, keepdims=True)
        p = jnp.exp(masked - m) * adj
        denom = jnp.sum(p, axis=-1, keepdims=True)
        attn = p * jnp.where(denom > 0, 1.0 / denom, 0.0)
        outs.append(attn @ vh)
    h_tc = jnp.concatenate(outs, axis=-1) + skip
    h_node = h_tc + mlp(h_tc, wu1, bu1, wu2, bu2, wu3, bu3)
    h_cat = jnp.concatenate([x, h_node], axis=-1)
    h_dag = seg_nd @ mlp(h_cat, wd1, bd1, wd2, bd2, wd3, bd3)
    h_glob = seg_do @ mlp(h_dag, wg1, bg1, wg2, bg2, wg3, bg3)
    return {"node": h_node, "dag": h_dag, "glob": h_glob}


# ------------------------------- param init -----------------------------------
def init_linear(key, fan_in, fan_out):
    kw, kb = jax.random.split(key)
    bound = 1.0 / float(fan_in) ** 0.5
    w = jax.random.uniform(kw, (fan_in, fan_out), jnp.float32, -bound, bound)
    b = jax.random.uniform(kb, (1, fan_out), jnp.float32, -bound, bound)
    return [w, b]


def init_mlp(key, dims):
    ps = []
    keys = jax.random.split(key, len(dims) - 1)
    for kk, fi, fo in zip(keys, dims[:-1], dims[1:]):
        ps += init_linear(kk, fi, fo)
    return ps


def csr_to_segment_matrix(ptr, n_rows):
    idx = jnp.arange(n_rows)[None, :]
    starts = ptr[:-1][:, None]
    ends = ptr[1:][:, None]
    return ((idx >= starts) & (idx < ends)).astype(jnp.float32)


# ----------------------------------- main --------------------------------------
if __name__ == "__main__":
    N, F, D = 64, 8, 32           # nodes, node features, embed_dim (D % 4 == 0)
    H1, H2 = 32, 16               # mlp_kwargs hid_dims
    E = 96                        # edges
    G, O = 4, 2                   # dags, observations
    TILE_N = 32                   # dst-node rows per grid step -> grid = (2,)

    key = jax.random.PRNGKey(0)
    (k_prep, k_q, k_k, k_v, k_s, k_upd,
     k_dag, k_glob, k_x, k_e) = jax.random.split(key, 10)

    params = []
    params += init_mlp(k_prep, [F, H1, H2, D])                 # mlp_prep
    for kk in (k_q, k_k, k_v, k_s):                            # transformer conv
        params += init_linear(kk, D, D)
    params += init_mlp(k_upd, [D, H1, H2, D])                  # mlp_update
    params += init_mlp(k_dag, [F + D, H1, H2, D])              # dag mlp
    params += init_mlp(k_glob, [D, H1, H2, D])                 # global mlp
    params = [jnp.asarray(p, jnp.float32) for p in params]

    # graph data
    x = jax.random.normal(k_x, (N, F), jnp.float32)
    src = jax.random.randint(k_e, (E,), 0, N)
    dst = jax.random.randint(jax.random.fold_in(k_e, 1), (E,), 0, N)
    adj = jnp.zeros((N, N), jnp.float32).at[dst, src].set(1.0)   # adj[dst, src]

    ptr = jnp.array([0, 16, 32, 48, 64], jnp.int32)              # dag boundaries
    obs_ptr = jnp.array([0, 2, 4], jnp.int32)                    # obs boundaries
    seg_nd = csr_to_segment_matrix(ptr, N)                       # [G, N]
    seg_do = csr_to_segment_matrix(obs_ptr, G)                   # [O, G]
    seg_nd_t = seg_nd.T                                          # node-major [N, G]

    ref = reference_forward(x, adj, seg_nd, seg_do, params)

    # f32 path: strict correctness check
    out = encoder_forward(x, adj, seg_nd_t, seg_do, params, tile_n=TILE_N)
    out = jax.block_until_ready(out)
    for name in ("node", "dag", "glob"):
        assert out[name].shape == ref[name].shape, name
        assert jnp.allclose(out[name], ref[name], rtol=1e-4, atol=1e-4), name

    # bf16 matmul-operand path: loose tolerance check
    out_bf16 = encoder_forward(x, adj, seg_nd_t, seg_do, params,
                               tile_n=TILE_N, use_bf16=True)
    out_bf16 = jax.block_until_ready(out_bf16)
    for name in ("node", "dag", "glob"):
        assert bool(jnp.all(jnp.isfinite(out_bf16[name]))), name
        assert jnp.allclose(out_bf16[name], ref[name], rtol=2e-1, atol=2e-1), name

    print("KERNEL_OK")
</pallas_src>

<mosaic_0001>
module attributes {stable_mosaic.version = 11 : i64} {
  func.func @prepass_kernel(%arg0: i32, %arg1: memref<32x8xf32, #tpu.memory_space<vmem>>, %arg2: memref<8x32xf32, #tpu.memory_space<vmem>>, %arg3: memref<1x32xf32, #tpu.memory_space<vmem>>, %arg4: memref<32x16xf32, #tpu.memory_space<vmem>>, %arg5: memref<1x16xf32, #tpu.memory_space<vmem>>, %arg6: memref<16x32xf32, #tpu.memory_space<vmem>>, %arg7: memref<1x32xf32, #tpu.memory_space<vmem>>, %arg8: memref<32x128xf32, #tpu.memory_space<vmem>>, %arg9: memref<1x128xf32, #tpu.memory_space<vmem>>, %arg10: memref<32x128xf32, #tpu.memory_space<vmem>>) attributes {dimension_semantics = [#tpu.dimension_semantics<parallel>], iteration_bounds = array<i64: 2>, scalar_prefetch = 0 : i64, scratch_operands = 0 : i64, tpu.core_type = #tpu.core_type<tc>, window_params = [{transform_indices = @transform_0, window_bounds = array<i64: 32, 8>}, {pipeline_mode = #tpu.pipeline_mode<synchronous>, transform_indices = @transform_1, window_bounds = array<i64: 8, 32>}, {pipeline_mode = #tpu.pipeline_mode<synchronous>, transform_indices = @transform_2, window_bounds = array<i64: 1, 32>}, {pipeline_mode = #tpu.pipeline_mode<synchronous>, transform_indices = @transform_3, window_bounds = array<i64: 32, 16>}, {pipeline_mode = #tpu.pipeline_mode<synchronous>, transform_indices = @transform_4, window_bounds = array<i64: 1, 16>}, {pipeline_mode = #tpu.pipeline_mode<synchronous>, transform_indices = @transform_5, window_bounds = array<i64: 16, 32>}, {pipeline_mode = #tpu.pipeline_mode<synchronous>, transform_indices = @transform_6, window_bounds = array<i64: 1, 32>}, {pipeline_mode = #tpu.pipeline_mode<synchronous>, transform_indices = @transform_7, window_bounds = array<i64: 32, 128>}, {pipeline_mode = #tpu.pipeline_mode<synchronous>, transform_indices = @transform_8, window_bounds = array<i64: 1, 128>}, {transform_indices = @transform_9, window_bounds = array<i64: 32, 128>}]} {
    %c0 = arith.constant 0 : index
    %c0_0 = arith.constant 0 : index
    %0 = vector.load %arg1[%c0, %c0_0] : memref<32x8xf32, #tpu.memory_space<vmem>>, vector<32x8xf32>
    %c0_1 = arith.constant 0 : index
    %c0_2 = arith.constant 0 : index
    %1 = vector.load %arg2[%c0_1, %c0_2] : memref<8x32xf32, #tpu.memory_space<vmem>>, vector<8x32xf32>
    %cst = arith.constant dense<0.000000e+00> : vector<32x32xf32>
    %2 = tpu.matmul %0, %1, %cst {dimension_numbers = #tpu.dot_dimension_numbers<[1], [0], [0], [1], [0, 0, 1, 1], [], []>} : vector<32x8xf32>, vector<8x32xf32>, vector<32x32xf32> -> vector<32x32xf32>
    %c0_3 = arith.constant 0 : index
    %c0_4 = arith.constant 0 : index
    %3 = vector.load %arg3[%c0_3, %c0_4] : memref<1x32xf32, #tpu.memory_space<vmem>>, vector<1x32xf32>
    %4 = vector.broadcast %3 : vector<1x32xf32> to vector<32x32xf32>
    %5 = arith.addf %2, %4 : vector<32x32xf32>
    %cst_5 = arith.constant 0.000000e+00 : f32
    %6 = vector.broadcast %cst_5 : f32 to vector<32x32xf32>
    %7 = arith.cmpf oge, %5, %6 : vector<32x32xf32>
    %cst_6 = arith.constant 0.00999999977 : f32
    %8 = vector.broadcast %cst_6 : f32 to vector<32x32xf32>
    %9 = arith.mulf %8, %5 : vector<32x32xf32>
    %10 = arith.select %7, %5, %9 : vector<32x32xi1>, vector<32x32xf32>
    %c0_7 = arith.constant 0 : index
    %c0_8 = arith.constant 0 : index
    %11 = vector.load %arg4[%c0_7, %c0_8] : memref<32x16xf32, #tpu.memory_space<vmem>>, vector<32x16xf32>
    %cst_9 = arith.constant dense<0.000000e+00> : vector<32x16xf32>
    %12 = tpu.matmul %10, %11, %cst_9 {dimension_numbers = #tpu.dot_dimension_numbers<[1], [0], [0], [1], [0, 0, 1, 1], [], []>} : vector<32x32xf32>, vector<32x16xf32>, vector<32x16xf32> -> vector<32x16xf32>
    %c0_10 = arith.constant 0 : index
    %c0_11 = arith.constant 0 : index
    %13 = vector.load %arg5[%c0_10, %c0_11] : memref<1x16xf32, #tpu.memory_space<vmem>>, vector<1x16xf32>
    %14 = vector.broadcast %13 : vector<1x16xf32> to vector<32x16xf32>
    %15 = arith.addf %12, %14 : vector<32x16xf32>
    %cst_12 = arith.constant 0.000000e+00 : f32
    %16 = vector.broadcast %cst_12 : f32 to vector<32x16xf32>
    %17 = arith.cmpf oge, %15, %16 : vector<32x16xf32>
    %cst_13 = arith.constant 0.00999999977 : f32
    %18 = vector.broadcast %cst_13 : f32 to vector<32x16xf32>
    %19 = arith.mulf %18, %15 : vector<32x16xf32>
    %20 = arith.select %17, %15, %19 : vector<32x16xi1>, vector<32x16xf32>
    %c0_14 = arith.constant 0 : index
    %c0_15 = arith.constant 0 : index
    %21 = vector.load %arg6[%c0_14, %c0_15] : memref<16x32xf32, #tpu.memory_space<vmem>>, vector<16x32xf32>
    %cst_16 = arith.constant dense<0.000000e+00> : vector<32x32xf32>
    %22 = tpu.matmul %20, %21, %cst_16 {dimension_numbers = #tpu.dot_dimension_numbers<[1], [0], [0], [1], [0, 0, 1, 1], [], []>} : vector<32x16xf32>, vector<16x32xf32>, vector<32x32xf32> -> vector<32x32xf32>
    %c0_17 = arith.constant 0 : index
    %c0_18 = arith.constant 0 : index
    %23 = vector.load %arg7[%c0_17, %c0_18] : memref<1x32xf32, #tpu.memory_space<vmem>>, vector<1x32xf32>
    %24 = vector.broadcast %23 : vector<1x32xf32> to vector<32x32xf32>
    %25 = arith.addf %22, %24 : vector<32x32xf32>
    %c0_19 = arith.constant 0 : index
    %c0_20 = arith.constant 0 : index
    %26 = vector.load %arg8[%c0_19, %c0_20] : memref<32x128xf32, #tpu.memory_space<vmem>>, vector<32x128xf32>
    %cst_21 = arith.constant dense<0.000000e+00> : vector<32x128xf32>
    %27 = tpu.matmul %25, %26, %cst_21 {dimension_numbers = #tpu.dot_dimension_numbers<[1], [0], [0], [1], [0, 0, 1, 1], [], []>} : vector<32x32xf32>, vector<32x128xf32>, vector<32x128xf32> -> vector<32x128xf32>
    %c0_22 = arith.constant 0 : index
    %c0_23 = arith.constant 0 : index
    %28 = vector.load %arg9[%c0_22, %c0_23] : memref<1x128xf32, #tpu.memory_space<vmem>>, vector<1x128xf32>
    %29 = vector.broadcast %28 : vector<1x128xf32> to vector<32x128xf32>
    %30 = arith.addf %27, %29 : vector<32x128xf32>
    %c0_24 = arith.constant 0 : index
    %c0_25 = arith.constant 0 : index
    %31 = vector.load %arg10[%c0_24, %c0_25] : memref<32x128xf32, #tpu.memory_space<vmem>>, vector<32x128xf32>
    tpu.vector_store %arg10[%c0_24, %c0_25], %30 {strides = array<i32>} : memref<32x128xf32, #tpu.memory_space<vmem>>, vector<32x128xf32>,
    return
  }
  func.func @transform_0(%arg0: i32) -> (i32, i32) {
    %c0_i32 = arith.constant 0 : i32
    %c0_i32_0 = arith.constant 0 : i32
    return %arg0, %c0_i32 : i32, i32
  }
  func.func @transform_1(%arg0: i32) -> (i32, i32) {
    %c0_i32 = arith.constant 0 : i32
    %c0_i32_0 = arith.constant 0 : i32
    %c0_i32_1 = arith.constant 0 : i32
    return %c0_i32, %c0_i32_0 : i32, i32
  }
  func.func @transform_2(%arg0: i32) -> (i32, i32) {
    %c0_i32 = arith.constant 0 : i32
    %c0_i32_0 = arith.constant 0 : i32
    %c0_i32_1 = arith.constant 0 : i32
    return %c0_i32, %c0_i32_0 : i32, i32
  }
  func.func @transform_3(%arg0: i32) -> (i32, i32) {
    %c0_i32 = arith.constant 0 : i32
    %c0_i32_0 = arith.constant 0 : i32
    %c0_i32_1 = arith.constant 0 : i32
    return %c0_i32, %c0_i32_0 : i32, i32
  }
  func.func @transform_4(%arg0: i32) -> (i32, i32) {
    %c0_i32 = arith.constant 0 : i32
    %c0_i32_0 = arith.constant 0 : i32
    %c0_i32_1 = arith.constant 0 : i32
    return %c0_i32, %c0_i32_0 : i32, i32
  }
  func.func @transform_5(%arg0: i32) -> (i32, i32) {
    %c0_i32 = arith.constant 0 : i32
    %c0_i32_0 = arith.constant 0 : i32
    %c0_i32_1 = arith.constant 0 : i32
    return %c0_i32, %c0_i32_0 : i32, i32
  }
  func.func @transform_6(%arg0: i32) -> (i32, i32) {
    %c0_i32 = arith.constant 0 : i32
    %c0_i32_0 = arith.constant 0 : i32
    %c0_i32_1 = arith.constant 0 : i32
    return %c0_i32, %c0_i32_0 : i32, i32
  }
  func.func @transform_7(%arg0: i32) -> (i32, i32) {
    %c0_i32 = arith.constant 0 : i32
    %c0_i32_0 = arith.constant 0 : i32
    %c0_i32_1 = arith.constant 0 : i32
    return %c0_i32, %c0_i32_0 : i32, i32
  }
  func.func @transform_8(%arg0: i32) -> (i32, i32) {
    %c0_i32 = arith.constant 0 : i32
    %c0_i32_0 = arith.constant 0 : i32
    %c0_i32_1 = arith.constant 0 : i32
    return %c0_i32, %c0_i32_0 : i32, i32
  }
  func.func @transform_9(%arg0: i32) -> (i32, i32) {
    %c0_i32 = arith.constant 0 : i32
    %c0_i32_0 = arith.constant 0 : i32
    return %arg0, %c0_i32 : i32, i32
  }
}

</mosaic_0001>

<bundles_post_ra>
// kernel: tpu_custom_call.1
= control target key start
LH: loop header
LB: loop body
LE: loop exit
PB: predicated region body
PF: predicated region fallthrough
CT: control target
= control target key end

     0   :  { %14 = vsyncpa [#allocation3], 0  ;;  %s969_s0 = inlined_call_operand.vmem [shape: f32[64,8], index: 0, kind: input, shape index: {}]   ;;  %s970_s1 = inlined_call_operand.vmem [shape: f32[8,32], index: 1, kind: input, shape index: {}]   ;;  %s971_s2 = inlined_call_operand.vmem [shape: f32[1,32], index: 2, kind: input, shape index: {}]   ;;  %s972_s3 = inlined_call_operand.vmem [shape: f32[32,16], index: 3, kind: input, shape index: {}]   ;;  %s973_s4 = inlined_call_operand.vmem [shape: f32[1,16], index: 4, kind: input, shape index: {}]   ;;  %s974_s5 = inlined_call_operand.vmem [shape: f32[16,32], index: 5, kind: input, shape index: {}]   ;;  %s975_s6 = inlined_call_operand.vmem [shape: f32[1,32], index: 6, kind: input, shape index: {}]   ;;  %s976_s7 = inlined_call_operand.vmem [shape: f32[32,128], index: 7, kind: input, shape index: {}]   ;;  %s977_s8 = inlined_call_operand.vmem [shape: f32[1,128], index: 8, kind: input, shape index: {}]   ;;  %s978_s9 = inlined_call_operand.hbm [shape: f32[64,128], index: 9, kind: output, shape index: {}]  }
   0x1   :  { %16 = vsyncpa [#allocation3 + $0x1], 0  ;;  %s828_s30 = smov 0   ;;  %s830_s10 = smov 0  }
   0x2   :  { %s832_s11 = smov 0   ;;  %s834_s12 = smov 0  }
   0x3 LB: > { %s849_s13 = sadd.s32 4294967295, %s774_s12   ;;  %s638_s14 = sadd.s32 4294967294, %s774_s12   ;;  %s774_s12 = sphi %s834_s12, %s984_s12   ;;  %s770_s11 = sphi %s832_s11, %s983_s11   ;;  %s766_s10 = sphi %s830_s10, %s982_s10   ;;  %s762_s30 = sphi %s828_s30, %s981_s30  }
   0x4   : > { %s853_s15 = sadd.s32 1, %s774_s12   ;;  %s223_s16 = sadd.s32 1, %s770_s11 }
   0x5   : > { %s220_s17 = ssub.s32 %s774_s12, %s853_s15  ;;  %p233_p0 = scmp.ne.s32.totalorder %s770_s11, %s766_s10 }
   0x6   : > { %p221_p1 = scmp.eq.s32.totalorder %s220_s17, 0  ;;  %p234_p2 = scmp.eq.s32.totalorder %s849_s13, 1 }
   0x7   : > { %p239_p3 = scmp.ne.s32.totalorder %s766_s10, %s762_s30  ;;  %p240_p4 = scmp.eq.s32.totalorder %s638_s14, 1 }
   0x8   : > { %s864_s18 = scalar_select %p221_p1, %s770_s11, %s223_s16  }
   0x9   : > { %p866_p5 = por %p234_p2, %p233_p0  ;;  %p870_p6 = por %p240_p4, %p239_p3 }
   0xa   : > { %p641_p7 = scmp.ge.s32.totalorder %s774_s12, 1  ;;  %p291_p8 = scmp.lt.s32.totalorder %s774_s12, 3 }
   0xc   : > { %p292_p9 = pnand %p641_p7, %p291_p8 }
   0xd   : > { %s643_s23 = sshll.u32 (!%p292_p9), %s849_s13, 2  ;;  %s324_s14 = sand.u32 (!%p292_p9), 1, %s766_s10  }
   0xe   : > { %295 = sbr.rel (%p292_p9) target bundleno = 581 (0x245), region = 56  ;;  %p328_p10 = scmp.lt.s32.totalorder (!%p292_p9), %s643_s23, 7 }
   0xf   : > { %s642_s16 = sshll.u32 (!%p292_p9), %s324_s14, 5 }
  0x10   : > { %s326_s22 = scalar_lea.vmem (!%p292_p9), [#allocation2], %s642_s16 }
  0x11   : > { %s573_s27 = sshll.u32 (!%p292_p9), %s326_s22, 4  ;;  %s574_s27 = int_to_ptr.vmem [resolvable:$true] %s573_s27 }
  0x13   : > { %v338_v0 = vld [vmem:[%s970_s1] sm:$0xff]  ;;  %v400_v1 = vld [vmem:[%s972_s3 + $0x18] sm:$0xff]  ;;  %s986_s23 = smov (!%p328_p10, %s643_s23), 7  ;;  %vm343_vm0 = vcmask 64512   ;;  %v399_v6 = vld [vmem:[%s972_s3 + $0x10] sm:$0xff]  ;;  %vm405_vm2 = vcmask 261120  }
  0x14   : > { %371 = vmatpush.msra.mxu0 %v338_v0  ;;  %430 = vmatpush.msra.mxu1 %v400_v1  ;;  %s644_s26 = sshll.u32 %s986_s23, 3  ;;  %v398_v7 = vld [vmem:[%s972_s3 + $0x8] sm:$0xff]  ;;  %v397_v8 = vld [vmem:[%s972_s3] sm:$0xff]  ;;  %v510_v29 = vld [vmem:[%s976_s7 + $0x18] sm:$0xff]  ;;  %vm465_vm7 = vcmask 130048   ;;  %s666_s23 = sshll.u32 %s849_s13, 5 }
  0x15   : > { %s331_s29 = scalar_lea.vmem %s969_s0, %s644_s26  ;;  %v708_v9 = vld [vmem:[%s971_s2] ss:$0 sm:$0xff]  ;;  %v460_v26 = vld [vmem:[%s974_s5 + $0x8] sm:$0xff]  ;;  %v509_v30 = vld [vmem:[%s976_s7 + $0x10] sm:$0xff]  ;;  %539 = vmatpush.msra.mxu3 %v510_v29  ;;  %s572_s26 = scalar_lea.hbm %s978_s9, %s666_s23 }
  0x16   : > { %v334_v2 = vld [vmem:[%s331_s29] sm:$0xff]  ;;  %v335_v3 = vld [vmem:[%s331_s29 + $0x8] sm:$0xff]  ;;  %v336_v4 = vld [vmem:[%s331_s29 + $0x10] sm:$0xff]  ;;  %431 = vmatpush.msra.mxu1 %v399_v6  ;;  %492 = vmatpush.msra.mxu2 %v460_v26  ;;  %s575_s28 = sshll.u32 %s572_s26, 4  ;;  %s732_s23 = scalar_lea.hbm %s978_s9, 64  ;;  %s576_s28 = int_to_ptr.hbm [resolvable:$true] %s575_s28 }
  0x17   : > { %645 = vmatmul.msk.f32.vlgmr.msra.gmra.mxu0 %vm343_vm0, %v334_v2  ;;  %v337_v5 = vld [vmem:[%s331_s29 + $0x18] sm:$0xff]  ;;  %v459_v27 = vld [vmem:[%s974_s5] sm:$0xff]  ;;  %540 = vmatpush.msra.mxu3 %v509_v30  ;;  %v508_v47 = vld [vmem:[%s976_s7 + $0x8] sm:$0xff]  ;;  %s561_s29 = scalar_lea.sflag [#allocation3], %s324_s14  ;;  %s726_s16 = sshra.s32 %s576_s28, 4  ;;  %s727_s16 = int_to_ptr.hbm [resolvable:$true] %s726_s16 }
  0x18   : > { %432 = vmatpush.msra.mxu1 %v398_v7  ;;  %493 = vmatpush.msra.mxu2 %v459_v27  ;;  %v709_v28 = vld [vmem:[%s973_s4] ss:$0 sm:$0xff]  ;;  %s728_s17 = scalar_lea.hbm %s727_s16, 32  ;;  %p733_p0 = scmp.lt.s32.totalorder %s727_s16, %s978_s9 }
  0x19   : > { %541 = vmatpush.msra.mxu3 %v508_v47  ;;  %v507_v48 = vld [vmem:[%s976_s7] sm:$0xff]  ;;  %p729_p11 = scmp.ne.s32.totalorder %s727_s16, %s728_s17  ;;  %p734_p1 = scmp.lt.s32.totalorder %s732_s23, %s728_s17 }
  0x1a   : > { %433 = vmatpush.msra.mxu1 %v397_v8  ;;  %v710_v49 = vld [vmem:[%s975_s6] ss:$0 sm:$0xff] }
  0x1b   : > { %542 = vmatpush.msra.mxu3 %v507_v48  ;;  %v711_v58 = vld [vmem:[%s977_s8] ss:$0 sm:$0xff]  ;;  %p730_p12 = pnand %p729_p11, %p866_p5  ;;  %p735_p2 = por %p734_p1, %p733_p0 }
  0x1d   : > { %p731_p13 = pneg %p730_p12 }
  0x1f   : > { %646 = vmatmul.msk.f32.gmra.mxu0 %vm343_vm0, %v335_v3  ;;  %p736_p3 = pnand %p735_p2, %p731_p13 }
  0x27   : > { %647 = vmatmul.msk.f32.gmra.mxu0 %vm343_vm0, %v336_v4 }
  0x2f   : > { %648 = vmatmul.msk.f32.gmra.mxu0 %vm343_vm0, %v337_v5 }
  0x94   : > { %v373_v10 = vpop.f32.mrf.mxu0 }
  0x95   : > { %v374_v11 = vadd.f32 %v708_v9, %v373_v10 }
  0x97   : > { %v389_v12 = vmul.f32 0.01, %v374_v11  ;;  %vm385_vm1 = vcmp.ge.f32.partialorder %v374_v11, 0.0 }
  0x99   : > { %v393_v13 = vsel %vm385_vm1, %v374_v11, %v389_v12 }
  0x9a   : > { %649 = vmatmul.msk.f32.vlgmr.msra.gmra.mxu1 %vm405_vm2, %v393_v13 }
  0x9c   : > { %v376_v14 = vpop.f32.mrf.mxu0 }
  0x9d   : > { %v377_v15 = vadd.f32 %v708_v9, %v376_v14 }
  0x9f   : > { %v390_v16 = vmul.f32 0.01, %v377_v15  ;;  %vm386_vm3 = vcmp.ge.f32.partialorder %v377_v15, 0.0 }
  0xa1   : > { %v394_v17 = vsel %vm386_vm3, %v377_v15, %v390_v16 }
  0xa2   : > { %650 = vmatmul.msk.f32.gmra.mxu1 %vm405_vm2, %v394_v17 }
  0xa4   : > { %v379_v18 = vpop.f32.mrf.mxu0 }
  0xa5   : > { %v380_v19 = vadd.f32 %v708_v9, %v379_v18 }
  0xa7   : > { %v391_v20 = vmul.f32 0.01, %v380_v19  ;;  %vm387_vm4 = vcmp.ge.f32.partialorder %v380_v19, 0.0 }
  0xa9   : > { %v395_v21 = vsel %vm387_vm4, %v380_v19, %v391_v20 }
  0xaa   : > { %651 = vmatmul.msk.f32.gmra.mxu1 %vm405_vm2, %v395_v21 }
  0xac   : > { %v382_v22 = vpop.f32.mrf.mxu0 }
  0xad   : > { %v383_v23 = vadd.f32 %v708_v9, %v382_v22 }
  0xaf   : > { %v392_v24 = vmul.f32 0.01, %v383_v23  ;;  %vm388_vm5 = vcmp.ge.f32.partialorder %v383_v23, 0.0 }
  0xb1   : > { %v396_v25 = vsel %vm388_vm5, %v383_v23, %v392_v24 }
  0xb2   : > { %652 = vmatmul.msk.f32.gmra.mxu1 %vm405_vm2, %v396_v25 }
 0x117   : > { %v435_v31 = vpop.f32.mrf.mxu1 }
 0x118   : > { %v436_v32 = vadd.f32 %v709_v28, %v435_v31 }
 0x11a   : > { %v451_v33 = vmul.f32 0.01, %v436_v32  ;;  %vm447_vm6 = vcmp.ge.f32.partialorder %v436_v32, 0.0 }
 0x11c   : > { %v455_v34 = vsel %vm447_vm6, %v436_v32, %v451_v33 }
 0x11d   : > { %653 = vmatmul.msk.f32.vlgmr.msra.gmra.mxu2 %vm465_vm7, %v455_v34 }
 0x11f   : > { %v438_v35 = vpop.f32.mrf.mxu1 }
 0x120   : > { %v439_v36 = vadd.f32 %v709_v28, %v438_v35 }
 0x122   : > { %v452_v37 = vmul.f32 0.01, %v439_v36  ;;  %vm448_vm8 = vcmp.ge.f32.partialorder %v439_v36, 0.0 }
 0x124   : > { %v456_v38 = vsel %vm448_vm8, %v439_v36, %v452_v37 }
 0x125   : > { %654 = vmatmul.msk.f32.gmra.mxu2 %vm465_vm7, %v456_v38 }
 0x127   : > { %v441_v39 = vpop.f32.mrf.mxu1 }
 0x128   : > { %v442_v40 = vadd.f32 %v709_v28, %v441_v39 }
 0x12a   : > { %v453_v41 = vmul.f32 0.01, %v442_v40  ;;  %vm449_vm9 = vcmp.ge.f32.partialorder %v442_v40, 0.0 }
 0x12c   : > { %v457_v42 = vsel %vm449_vm9, %v442_v40, %v453_v41 }
 0x12d   : > { %655 = vmatmul.msk.f32.gmra.mxu2 %vm465_vm7, %v457_v42 }
 0x12f   : > { %v444_v43 = vpop.f32.mrf.mxu1 }
 0x130   : > { %v445_v44 = vadd.f32 %v709_v28, %v444_v43 }
 0x132   : > { %v454_v45 = vmul.f32 0.01, %v445_v44  ;;  %vm450_vm10 = vcmp.ge.f32.partialorder %v445_v44, 0.0 }
 0x134   : > { %v458_v46 = vsel %vm450_vm10, %v445_v44, %v454_v45 }
 0x135   : > { %656 = vmatmul.msk.f32.gmra.mxu2 %vm465_vm7, %v458_v46 }
 0x1a0   : > { %v495_v50 = vpop.f32.mrf.mxu2 }
 0x1a1   : > { %v496_v51 = vadd.f32 %v710_v49, %v495_v50 }
 0x1a3   : > { %657 = vmatmul.msk.f32.vlgmr.msra.gmra.mxu3 %vm405_vm2, %v496_v51 }
 0x1a8   : > { %v498_v52 = vpop.f32.mrf.mxu2 }
 0x1a9   : > { %v499_v53 = vadd.f32 %v710_v49, %v498_v52 }
 0x1ab   : > { %658 = vmatmul.msk.f32.gmra.mxu3 %vm405_vm2, %v499_v53 }
 0x1b0   : > { %v501_v54 = vpop.f32.mrf.mxu2 }
 0x1b1   : > { %v502_v55 = vadd.f32 %v710_v49, %v501_v54 }
 0x1b3   : > { %659 = vmatmul.msk.f32.gmra.mxu3 %vm405_vm2, %v502_v55 }
 0x1b8   : > { %v504_v56 = vpop.f32.mrf.mxu2 }
 0x1b9   : > { %v505_v57 = vadd.f32 %v710_v49, %v504_v56 }
 0x1bb   : > { %660 = vmatmul.msk.f32.gmra.mxu3 %vm405_vm2, %v505_v57 }
 0x226   : > { %v544_v59 = vpop.f32.mrf.mxu3 }
 0x227   : > { %v545_v60 = vadd.f32 %v711_v58, %v544_v59 }
 0x229   : > { %556 = vst [vmem:[%s326_s22] sm:$0xff] %v545_v60 }
 0x22e   : > { %v547_v61 = vpop.f32.mrf.mxu3 }
 0x22f   : > { %v548_v62 = vadd.f32 %v711_v58, %v547_v61 }
 0x231   : > { %557 = vst [vmem:[%s326_s22 + $0x8] sm:$0xff] %v548_v62 }
 0x236   : > { %v550_v63 = vpop.f32.mrf.mxu3 }
 0x237   : > { %v551_v0 = vadd.f32 %v711_v58, %v550_v63 }
 0x239   : > { %558 = vst [vmem:[%s326_s22 + $0x10] sm:$0xff] %v551_v0 }
 0x23e   : > { %v553_v1 = vpop.f32.mrf.mxu3 }
 0x23f   : > { %v554_v2 = vadd.f32 %v711_v58, %v553_v1 }
 0x241   : > { %559 = vst [vmem:[%s326_s22 + $0x18] sm:$0xff] %v554_v2 }
 0x242   : > { %739 = shalt.err (!%p736_p3)
}
 0x243   : > { %s776_s14 = smov 128   ;;  %s777_s22 = smov 8  }
 0x244   : > { %667 = dma.vmem_to_hbm [thread:$0]  (%p866_p5), %s574_s27, 512, %s576_s28, %s561_s29, %s776_s14, %s776_s14, %s777_s22  }
 0x245 PF: > { %p673_p4 = scmp.ge.s32.totalorder %s774_s12, 2  ;;  %s590_s26 = sand.u32 1, %s762_s30  }
 0x246   : > { %s591_s13 = scalar_lea.sflag [#allocation3], %s590_s26 }
 0x247   : > { %p670_p7 = pnand %p673_p4, %p870_p6 }
 0x249   : > { %p671_p8 = pneg %p670_p7 }
 0x24b   : > { %757 = dma.done.wait (%p671_p8), %s591_s13, 512  }
 0x24c   : > { %759 = vsyncadd (%p671_p8), %s591_s13, 4294966784  ;;  %p19_p9 = scmp.ge.s32.totalorder %s853_s15, 4   ;;  %s981_s30 = smov %s766_s10 }
 0x24d   : > { %s982_s10 = smov %s770_s11  ;;  %s983_s11 = smov %s864_s18 }
 0x24e   : > { %s984_s12 = smov %s853_s15  ;;  %21 = sbr.rel (!%p19_p9) target bundleno = 3 (0x3), region = 91 }
 0x253   :  { %597 = vsyncpa [#allocation3], 1 }
 0x254   :  { %599 = vsyncpa [#allocation3 + $0x1], 1 }

</bundles_post_ra>
